<compile_context>
chip_gen: v7x
topology: tpu7x:2x2x1
jax: 0.10.0
libtpu: 0.0.40
codegen_flags: <defaults>
</compile_context>

<pallas_src>
import functools

import jax
import jax.numpy as jnp
from jax.experimental import pallas as pl
from jax.experimental.pallas import tpu as pltpu


def _round_up(x, m):
    return (x + m - 1) // m * m


def _output_kernel(h_ref, res_ref, w_ref, b_ref, gamma_ref, beta_ref,
                   out_ref, acc_ref, *, eps, compute_dtype):
    """Grid point (i, k): accumulate dense(hidden) over K; epilogue at k==last."""
    k = pl.program_id(1)

    @pl.when(k == 0)
    def _():
        acc_ref[...] = jnp.zeros_like(acc_ref)

    # Dense projection partial product on the MXU, f32 accumulation.
    a = h_ref[...].astype(compute_dtype)
    acc_ref[...] += jnp.dot(a, w_ref[...], preferred_element_type=jnp.float32)

    @pl.when(k == pl.num_programs(1) - 1)
    def _():
        # Dropout: eval mode => identity.
        # TODO(synk): training-mode dropout (pltpu.prng_* + mask) not
        # implemented; eval-mode identity matches inference semantics.

        # Bias + residual add in f32.
        h = (acc_ref[...]
             + b_ref[...].astype(jnp.float32)
             + res_ref[...].astype(jnp.float32))

        # LayerNorm over the hidden (last) dim — one-pass mean/variance.
        hdim = h.shape[-1]
        inv_h = 1.0 / hdim
        s = jnp.sum(h, axis=-1, keepdims=True)
        sq = jnp.sum(h * h, axis=-1, keepdims=True)
        mean = s * inv_h
        var = sq * inv_h - mean * mean
        normed = (h - mean) * jax.lax.rsqrt(var + eps)     # rsqrt -> EUP slot
        out_ref[...] = (normed * gamma_ref[...].astype(jnp.float32)
                        + beta_ref[...].astype(jnp.float32)).astype(out_ref.dtype)


def output_forward(hidden_states, input_tensor, params, *, eps=1e-5,
                   compute_dtype=jnp.bfloat16, tm=256, tk=512):
    """Mirrors Output.forward: LayerNorm(dropout(dense(hidden)) + input)."""
    B, L, I = hidden_states.shape
    H = input_tensor.shape[-1]
    N = B * L

    # Flatten (B, L, .) -> (N, .): one matmul slab instead of B small ones.
    hs = hidden_states.reshape(N, I)
    res = input_tensor.reshape(N, H)
    # Weight passed in compute dtype (bf16 on v6e/v7x); f32 accumulation kept.
    w = params["w"].astype(compute_dtype)
    b = params["b"]
    gamma = params["gamma"]
    beta = params["beta"]

    # Row tile: up to `tm` rows, sublane aligned; ragged last block handled by
    # pl.cdiv (no pad / slice copies through HBM).
    TM = min(tm, _round_up(N, 8))
    grid_rows = pl.cdiv(N, TM)

    # K tile over the intermediate dim. Must divide I exactly (reduction-dim
    # padding is not maskable); fall back to a single full-K step otherwise.
    if I <= tk:
        TK = I
    else:
        TK = I
        for cand in range(tk - tk % 128, 0, -128):
            if I % cand == 0:
                TK = cand
                break
    grid_k = I // TK

    cbytes = jnp.dtype(compute_dtype).itemsize
    out_bytes = jnp.dtype(hidden_states.dtype).itemsize

    # Explicit VMEM budget (double-buffered streaming blocks + accumulator).
    vmem_needed = (
        2 * (TM * TK * 4            # hidden rows block (f32 in HBM)
             + TK * H * cbytes      # weight block
             + TM * H * 4           # residual block
             + TM * H * out_bytes)  # output block
        + TM * H * 4                # f32 accumulator scratch
        + 6 * H * 4                 # bias / gamma / beta (tiny)
    )
    vmem_limit = int(min(max(2 * vmem_needed, 32 * 1024 * 1024),
                         64 * 1024 * 1024))

    cost = pl.CostEstimate(
        flops=2 * N * I * H + 10 * N * H,
        transcendentals=N,
        bytes_accessed=(N * I * 4 + N * H * 4 + I * H * cbytes
                        + 3 * H * 4 + N * H * out_bytes),
    )

    kernel = functools.partial(_output_kernel, eps=eps,
                               compute_dtype=compute_dtype)

    out = pl.pallas_call(
        kernel,
        out_shape=jax.ShapeDtypeStruct((N, H), hidden_states.dtype),
        grid=(grid_rows, grid_k),
        in_specs=[
            pl.BlockSpec((TM, TK), lambda i, k: (i, k)),   # hidden rows
            pl.BlockSpec((TM, H), lambda i, k: (i, 0)),    # residual rows
            pl.BlockSpec((TK, H), lambda i, k: (k, 0)),    # weight (streamed)
            pl.BlockSpec((1, H), lambda i, k: (0, 0)),     # dense bias
            pl.BlockSpec((1, H), lambda i, k: (0, 0)),     # LayerNorm gamma
            pl.BlockSpec((1, H), lambda i, k: (0, 0)),     # LayerNorm beta
        ],
        out_specs=pl.BlockSpec((TM, H), lambda i, k: (i, 0)),
        scratch_shapes=[pltpu.VMEM((TM, H), jnp.float32)],
        compiler_params=pltpu.CompilerParams(
            dimension_semantics=("parallel", "arbitrary"),
            vmem_limit_bytes=vmem_limit),
        cost_estimate=cost,
    )(hs, res, w, b, gamma, beta)

    return out.reshape(B, L, H)


def reference_forward(hidden_states, input_tensor, params, eps=1e-5):
    """Pure-JAX f32 reference replicating the PyTorch semantics (eval mode)."""
    h = hidden_states @ params["w"] + params["b"][0]
    h = h + input_tensor
    mean = h.mean(-1, keepdims=True)
    var = ((h - mean) ** 2).mean(-1, keepdims=True)
    normed = (h - mean) / jnp.sqrt(var + eps)
    return normed * params["gamma"][0] + params["beta"][0]


if __name__ == "__main__":
    B, L = 2, 8
    INTERMEDIATE, HIDDEN = 64, 32     # intermediate_size, hidden_size

    key = jax.random.PRNGKey(0)
    keys = jax.random.split(key, 6)

    hidden_states = jax.random.normal(keys[0], (B, L, INTERMEDIATE),
                                      dtype=jnp.float32)
    input_tensor = jax.random.normal(keys[1], (B, L, HIDDEN),
                                     dtype=jnp.float32)

    scale = 0.1
    params = {
        # Stored as (I, H) = transpose of PyTorch Linear.weight (H, I),
        # so the kernel does x @ W + b.
        "w": scale * jax.random.normal(keys[2], (INTERMEDIATE, HIDDEN),
                                       dtype=jnp.float32),
        "b": scale * jax.random.normal(keys[3], (1, HIDDEN), dtype=jnp.float32),
        "gamma": 1.0 + 0.05 * jax.random.normal(keys[4], (1, HIDDEN),
                                                dtype=jnp.float32),
        "beta": 0.05 * jax.random.normal(keys[5], (1, HIDDEN),
                                         dtype=jnp.float32),
    }

    ref = reference_forward(hidden_states, input_tensor, params)

    # Default path: bf16 MXU operands, f32 accumulation (loosened tolerance).
    out_bf16 = output_forward(hidden_states, input_tensor, params)
    jax.block_until_ready(out_bf16)
    assert out_bf16.shape == (B, L, HIDDEN), f"bad output shape {out_bf16.shape}"
    assert jnp.allclose(out_bf16, ref, rtol=2e-2, atol=2e-2), \
        "Output mismatch (bf16 path)"

    # f32 path: verifies the fused structure exactly against the reference.
    out_f32 = output_forward(hidden_states, input_tensor, params,
                             compute_dtype=jnp.float32)
    jax.block_until_ready(out_f32)
    assert jnp.allclose(out_f32, ref, rtol=1e-4, atol=1e-4), \
        "Output mismatch (f32 path)"

    print("KERNEL_OK")
</pallas_src>

<mosaic_0001>
module attributes {stable_mosaic.version = 11 : i64} {
  func.func @_output_kernel(%arg0: i32, %arg1: i32, %arg2: memref<16x64xf32, #tpu.memory_space<vmem>>, %arg3: memref<16x32xf32, #tpu.memory_space<vmem>>, %arg4: memref<64x32xbf16, #tpu.memory_space<vmem>>, %arg5: memref<1x32xf32, #tpu.memory_space<vmem>>, %arg6: memref<1x32xf32, #tpu.memory_space<vmem>>, %arg7: memref<1x32xf32, #tpu.memory_space<vmem>>, %arg8: memref<16x32xf32, #tpu.memory_space<vmem>>, %arg9: memref<16x32xf32, #tpu.memory_space<vmem>>) attributes {dimension_semantics = [#tpu.dimension_semantics<parallel>, #tpu.dimension_semantics<arbitrary>], iteration_bounds = array<i64: 1, 1>, scalar_prefetch = 0 : i64, scratch_operands = 1 : i64, tpu.core_type = #tpu.core_type<tc>, window_params = [{transform_indices = @transform_0, window_bounds = array<i64: 16, 64>}, {transform_indices = @transform_1, window_bounds = array<i64: 16, 32>}, {transform_indices = @transform_2, window_bounds = array<i64: 64, 32>}, {pipeline_mode = #tpu.pipeline_mode<synchronous>, transform_indices = @transform_3, window_bounds = array<i64: 1, 32>}, {pipeline_mode = #tpu.pipeline_mode<synchronous>, transform_indices = @transform_4, window_bounds = array<i64: 1, 32>}, {pipeline_mode = #tpu.pipeline_mode<synchronous>, transform_indices = @transform_5, window_bounds = array<i64: 1, 32>}, {transform_indices = @transform_6, window_bounds = array<i64: 16, 32>}]} {
    %c0_i32 = arith.constant 0 : i32
    %0 = arith.cmpi eq, %arg1, %c0_i32 : i32
    %1 = arith.extui %0 : i1 to i32
    %c0_i32_0 = arith.constant 0 : i32
    %2 = arith.cmpi ne, %1, %c0_i32_0 : i32
    scf.if %2 {
      %cst_10 = arith.constant 0.000000e+00 : f32
      %13 = vector.broadcast %cst_10 : f32 to vector<16x32xf32>
      %c0_11 = arith.constant 0 : index
      %c0_12 = arith.constant 0 : index
      %14 = vector.load %arg9[%c0_11, %c0_12] : memref<16x32xf32, #tpu.memory_space<vmem>>, vector<16x32xf32>
      tpu.vector_store %arg9[%c0_11, %c0_12], %13 {strides = array<i32>} : memref<16x32xf32, #tpu.memory_space<vmem>>, vector<16x32xf32>,
    } else {
    }
    %c0 = arith.constant 0 : index
    %c0_1 = arith.constant 0 : index
    %3 = vector.load %arg2[%c0, %c0_1] : memref<16x64xf32, #tpu.memory_space<vmem>>, vector<16x64xf32>
    %4 = arith.truncf %3 : vector<16x64xf32> to vector<16x64xbf16>
    %c0_2 = arith.constant 0 : index
    %c0_3 = arith.constant 0 : index
    %5 = vector.load %arg9[%c0_2, %c0_3] : memref<16x32xf32, #tpu.memory_space<vmem>>, vector<16x32xf32>
    %c0_4 = arith.constant 0 : index
    %c0_5 = arith.constant 0 : index
    %6 = vector.load %arg4[%c0_4, %c0_5] : memref<64x32xbf16, #tpu.memory_space<vmem>>, vector<64x32xbf16>
    %cst = arith.constant dense<0.000000e+00> : vector<16x32xf32>
    %7 = tpu.matmul %4, %6, %cst {dimension_numbers = #tpu.dot_dimension_numbers<[1], [0], [0], [1], [0, 0, 1, 1], [], []>} : vector<16x64xbf16>, vector<64x32xbf16>, vector<16x32xf32> -> vector<16x32xf32>
    %8 = arith.addf %5, %7 : vector<16x32xf32>
    %c0_6 = arith.constant 0 : index
    %c0_7 = arith.constant 0 : index
    %9 = vector.load %arg9[%c0_6, %c0_7] : memref<16x32xf32, #tpu.memory_space<vmem>>, vector<16x32xf32>
    tpu.vector_store %arg9[%c0_6, %c0_7], %8 {strides = array<i32>} : memref<16x32xf32, #tpu.memory_space<vmem>>, vector<16x32xf32>,
    %c0_i32_8 = arith.constant 0 : i32
    %10 = arith.cmpi eq, %arg1, %c0_i32_8 : i32
    %11 = arith.extui %10 : i1 to i32
    %c0_i32_9 = arith.constant 0 : i32
    %12 = arith.cmpi ne, %11, %c0_i32_9 : i32
    scf.if %12 {
      %c0_10 = arith.constant 0 : index
      %c0_11 = arith.constant 0 : index
      %13 = vector.load %arg9[%c0_10, %c0_11] : memref<16x32xf32, #tpu.memory_space<vmem>>, vector<16x32xf32>
      %c0_12 = arith.constant 0 : index
      %c0_13 = arith.constant 0 : index
      %14 = vector.load %arg5[%c0_12, %c0_13] : memref<1x32xf32, #tpu.memory_space<vmem>>, vector<1x32xf32>
      %15 = vector.broadcast %14 : vector<1x32xf32> to vector<16x32xf32>
      %16 = arith.addf %13, %15 : vector<16x32xf32>
      %c0_14 = arith.constant 0 : index
      %c0_15 = arith.constant 0 : index
      %17 = vector.load %arg3[%c0_14, %c0_15] : memref<16x32xf32, #tpu.memory_space<vmem>>, vector<16x32xf32>
      %18 = arith.addf %16, %17 : vector<16x32xf32>
      %cst_16 = arith.constant dense<0.000000e+00> : vector<16xf32>
      %19 = vector.multi_reduction <add>, %18, %cst_16 [1] : vector<16x32xf32> to vector<16xf32>
      %20 = vector.shape_cast %19 : vector<16xf32> to vector<16x1xf32>
      %21 = arith.mulf %18, %18 : vector<16x32xf32>
      %cst_17 = arith.constant dense<0.000000e+00> : vector<16xf32>
      %22 = vector.multi_reduction <add>, %21, %cst_17 [1] : vector<16x32xf32> to vector<16xf32>
      %23 = vector.shape_cast %22 : vector<16xf32> to vector<16x1xf32>
      %cst_18 = arith.constant 3.125000e-02 : f32
      %24 = vector.broadcast %cst_18 : f32 to vector<16x1xf32>
      %25 = arith.mulf %20, %24 : vector<16x1xf32>
      %cst_19 = arith.constant 3.125000e-02 : f32
      %26 = vector.broadcast %cst_19 : f32 to vector<16x1xf32>
      %27 = arith.mulf %23, %26 : vector<16x1xf32>
      %28 = arith.mulf %25, %25 : vector<16x1xf32>
      %29 = arith.subf %27, %28 : vector<16x1xf32>
      %30 = vector.broadcast %25 : vector<16x1xf32> to vector<16x32xf32>
      %31 = arith.subf %18, %30 : vector<16x32xf32>
      %cst_20 = arith.constant 9.99999974E-6 : f32
      %32 = vector.broadcast %cst_20 : f32 to vector<16x1xf32>
      %33 = arith.addf %29, %32 : vector<16x1xf32>
      %34 = math.rsqrt %33 : vector<16x1xf32>
      %35 = vector.broadcast %34 : vector<16x1xf32> to vector<16x32xf32>
      %36 = arith.mulf %31, %35 : vector<16x32xf32>
      %c0_21 = arith.constant 0 : index
      %c0_22 = arith.constant 0 : index
      %37 = vector.load %arg6[%c0_21, %c0_22] : memref<1x32xf32, #tpu.memory_space<vmem>>, vector<1x32xf32>
      %38 = vector.broadcast %37 : vector<1x32xf32> to vector<16x32xf32>
      %39 = arith.mulf %36, %38 : vector<16x32xf32>
      %c0_23 = arith.constant 0 : index
      %c0_24 = arith.constant 0 : index
      %40 = vector.load %arg7[%c0_23, %c0_24] : memref<1x32xf32, #tpu.memory_space<vmem>>, vector<1x32xf32>
      %41 = vector.broadcast %40 : vector<1x32xf32> to vector<16x32xf32>
      %42 = arith.addf %39, %41 : vector<16x32xf32>
      %c0_25 = arith.constant 0 : index
      %c0_26 = arith.constant 0 : index
      %43 = vector.load %arg8[%c0_25, %c0_26] : memref<16x32xf32, #tpu.memory_space<vmem>>, vector<16x32xf32>
      tpu.vector_store %arg8[%c0_25, %c0_26], %42 {strides = array<i32>} : memref<16x32xf32, #tpu.memory_space<vmem>>, vector<16x32xf32>,
    } else {
    }
    return
  }
  func.func @transform_0(%arg0: i32, %arg1: i32) -> (i32, i32) {
    %c0_i32 = arith.constant 0 : i32
    return %arg0, %arg1 : i32, i32
  }
  func.func @transform_1(%arg0: i32, %arg1: i32) -> (i32, i32) {
    %c0_i32 = arith.constant 0 : i32
    %c0_i32_0 = arith.constant 0 : i32
    return %arg0, %c0_i32 : i32, i32
  }
  func.func @transform_2(%arg0: i32, %arg1: i32) -> (i32, i32) {
    %c0_i32 = arith.constant 0 : i32
    %c0_i32_0 = arith.constant 0 : i32
    return %arg1, %c0_i32 : i32, i32
  }
  func.func @transform_3(%arg0: i32, %arg1: i32) -> (i32, i32) {
    %c0_i32 = arith.constant 0 : i32
    %c0_i32_0 = arith.constant 0 : i32
    %c0_i32_1 = arith.constant 0 : i32
    return %c0_i32, %c0_i32_0 : i32, i32
  }
  func.func @transform_4(%arg0: i32, %arg1: i32) -> (i32, i32) {
    %c0_i32 = arith.constant 0 : i32
    %c0_i32_0 = arith.constant 0 : i32
    %c0_i32_1 = arith.constant 0 : i32
    return %c0_i32, %c0_i32_0 : i32, i32
  }
  func.func @transform_5(%arg0: i32, %arg1: i32) -> (i32, i32) {
    %c0_i32 = arith.constant 0 : i32
    %c0_i32_0 = arith.constant 0 : i32
    %c0_i32_1 = arith.constant 0 : i32
    return %c0_i32, %c0_i32_0 : i32, i32
  }
  func.func @transform_6(%arg0: i32, %arg1: i32) -> (i32, i32) {
    %c0_i32 = arith.constant 0 : i32
    %c0_i32_0 = arith.constant 0 : i32
    return %arg0, %c0_i32 : i32, i32
  }
}

</mosaic_0001>

<bundles_post_ra>
// kernel: tpu_custom_call.1
= control target key start
LH: loop header
LB: loop body
LE: loop exit
PB: predicated region body
PF: predicated region fallthrough
CT: control target
= control target key end

     0   :  { %v265_v1 = vmov 0.0   ;;  %vm266_vm0 = vmmov 0   ;;  %vm29_vm1 = vcmask 261120   ;;  %s360_s0 = inlined_call_operand.vmem [shape: f32[16,64], index: 0, kind: input, shape index: {}]   ;;  %s361_s1 = inlined_call_operand.vmem [shape: f32[16,32], index: 1, kind: input, shape index: {}]   ;;  %s362_s2 = inlined_call_operand.vmem [shape: bf16[64,32], index: 2, kind: input, shape index: {}]   ;;  %s363_s3 = inlined_call_operand.vmem [shape: f32[1,32], index: 3, kind: input, shape index: {}]   ;;  %s364_s4 = inlined_call_operand.vmem [shape: f32[1,32], index: 4, kind: input, shape index: {}]   ;;  %s365_s5 = inlined_call_operand.vmem [shape: f32[1,32], index: 5, kind: input, shape index: {}]   ;;  %s366_s6 = inlined_call_operand.hbm [shape: f32[16,32], index: 6, kind: output, shape index: {}]  }
   0x1   :  { %v233_v0 = vld [vmem:[%s362_s2] sm:$0xff]   ;;  %216 = vmatprep.subr.bf16.mxu0 %v265_v1  ;;  %v234_v2 = vld [vmem:[%s362_s2 + $0x8] sm:$0xff]   ;;  %224 = vmatprep.mubr.msk.bf16.mxu0 %vm266_vm0, %v265_v1  ;;  %30 = vst.msk [vmem:[#allocation2] sm:$0xff] %vm29_vm1, %v265_v1  ;;  %31 = vst.msk [vmem:[#allocation2 + $0x8] sm:$0xff] %vm29_vm1, %v265_v1 }
   0x2   :  { %217 = vmatpush3.bf16.msra.mxu0 %v233_v0 }
   0x3   :  { %218 = vmatprep.subr.bf16.mxu0 %v265_v1 }
   0x4   :  { %11 = vsyncpa [#allocation4], 0  ;;  %v235_v3 = vld [vmem:[%s362_s2 + $0x10] sm:$0xff]   ;;  %v236_v4 = vld [vmem:[%s362_s2 + $0x18] sm:$0xff]   ;;  %vm69_vm2 = vcmask 523264   ;;  %s267_s15 = smov [#allocation3]  }
   0x5   :  { %v32_v5 = vld [vmem:[%s360_s0] sm:$0xff]  ;;  %v33_v6 = vld [vmem:[%s360_s0 + $0x8] sm:$0xff]  ;;  %s192_s16 = sshll.u32 %s267_s15, 4  ;;  %s193_s16 = int_to_ptr.vmem [resolvable:$true] %s192_s16 }
   0x6   :  { %219 = vmatpush3.bf16.msra.mxu0 %v234_v2  ;;  %v34_v7 = vpack.c.bf16 %v33_v6, %v32_v5  ;;  %v208_v16 = vld [vmem:[%s363_s3] ss:$0 sm:$0xff]  ;;  %v134_v21 = vld [vmem:[%s361_s1 + $0x8] sm:$0xff]  ;;  %p246_p1 = scmp.lt.s32.totalorder %s193_s16, %s193_s16 }
   0x7   :  { %220 = vmatprep.subr.bf16.mxu0 %v265_v1  ;;  %v133_v18 = vld [vmem:[%s361_s1] sm:$0xff] }
   0x8   :  { %v35_v8 = vld [vmem:[#allocation2] sm:$0xff]  ;;  %v36_v10 = vld [vmem:[#allocation2 + $0x8] sm:$0xff] }
   0x9   :  { %v209_v47 = vld [vmem:[%s364_s4] ss:$0 sm:$0xff]  ;;  %s241_s4 = scalar_lea.vmem %s193_s16, 256 }
   0xa   :  { %221 = vmatpush3.bf16.msra.mxu0 %v235_v3  ;;  %v210_v49 = vld [vmem:[%s365_s5] ss:$0 sm:$0xff]  ;;  %p242_p0 = scmp.ne.s32.totalorder %s193_s16, %s241_s4  ;;  %p247_p2 = scmp.lt.s32.totalorder %s241_s4, %s241_s4 }
   0xb   :  { %222 = vmatprep.subr.bf16.mxu0 %v265_v1 }
   0xc   :  { %p248_p3 = por %p247_p2, %p246_p1 }
   0xe   :  { %223 = vmatpush3.bf16.msra.mxu0 %v236_v4  ;;  %p249_p4 = pnand %p248_p3, %p242_p0 }
  0x11   :  { %225 = vmatmul.mubr.msk.bf16.vlgmr.msra.gmra.mrb[0].mxu0 %vm69_vm2, %v34_v7 }
  0xe4   :  { %v107_v9 = vpop.f32.mrb[0].mxu0 }
  0xe5   :  { %v114_v11 = vadd.f32 %v107_v9, %v35_v8  ;;  %v226_v12 = vpop.f32.mrb[1].mxu0 }
  0xe6   :  { %v110_v13 = vpop.f32.mrb[2].mxu0 }
  0xe7   :  { %117 = vst.msk [vmem:[#allocation2] sm:$0xff] %vm29_vm1, %v114_v11  ;;  %v115_v14 = vadd.f32 %v110_v13, %v36_v10  ;;  %v227_v15 = vpop.f32.mrb[3].mxu0 }
  0xe9   :  { %118 = vst.msk [vmem:[#allocation2 + $0x8] sm:$0xff] %vm29_vm1, %v115_v14 }
  0xee   :  { %v122_v17 = vld [vmem:[#allocation2] sm:$0xff] }
  0xef   :  { %v131_v19 = vadd.f32 %v208_v16, %v122_v17 }
  0xf0   :  { %v123_v20 = vld [vmem:[#allocation2 + $0x8] sm:$0xff] }
  0xf1   :  { %v135_v22 = vadd.f32 %v133_v18, %v131_v19  ;;  %v132_v23 = vadd.f32 %v208_v16, %v123_v20 }
  0xf3   :  { %v137_v24 = vsel %vm29_vm1, %v135_v22, 0.0  ;;  %v143_v25 = vmul.f32 %v135_v22, %v135_v22  ;;  %v136_v26 = vadd.f32 %v134_v21, %v132_v23 }
  0xf4   :  { %138 = vadd.xlane.f32.xlu0 %v137_v24 }
  0xf5   :  { %v145_v27 = vsel %vm29_vm1, %v143_v25, 0.0  ;;  %v144_v28 = vmul.f32 %v136_v26, %v136_v26  ;;  %v140_v29 = vsel %vm29_vm1, %v136_v26, 0.0 }
  0xf6   :  { %146 = vadd.xlane.f32.xlu1 %v145_v27 }
  0xf7   :  { %v148_v30 = vsel %vm29_vm1, %v144_v28, 0.0 }
  0xf8   :  { %141 = vadd.xlane.f32.xlu0 %v140_v29 }
  0xfa   :  { %149 = vadd.xlane.f32.xlu1 %v148_v30 }
 0x181   :  { %v139_v31 = vpop.xlane.xlu0 %138 }
 0x182   :  { %v151_v32 = vmul.f32 0.03125, %v139_v31 }
 0x183   :  { %v147_v33 = vpop.xlane.xlu1 %146 }
 0x184   :  { %v155_v34 = vmul.f32 %v151_v32, %v151_v32  ;;  %v153_v35 = vmul.f32 0.03125, %v147_v33  ;;  %v159_v45 = vsub.f32 %v135_v22, %v151_v32 }
 0x185   :  { %v142_v36 = vpop.xlane.xlu0 %141 }
 0x186   :  { %v157_v37 = vsub.f32 %v153_v35, %v155_v34  ;;  %v152_v38 = vmul.f32 0.03125, %v142_v36 }
 0x187   :  { %v150_v39 = vpop.xlane.xlu1 %149 }
 0x188   :  { %v161_v40 = vadd.f32 1e-05, %v157_v37  ;;  %v156_v41 = vmul.f32 %v152_v38, %v152_v38  ;;  %v154_v42 = vmul.f32 0.03125, %v150_v39  ;;  %v160_v50 = vsub.f32 %v136_v26, %v152_v38 }
 0x18a   :  { %237 = vrsqrt.f32 %v161_v40  ;;  %v158_v43 = vsub.f32 %v154_v42, %v156_v41 }
 0x18c   :  { %v162_v44 = vadd.f32 1e-05, %v158_v43 }
 0x18e   :  { %239 = vrsqrt.f32 %v162_v44 }
 0x194   :  { %v238_v46 = vpop.eup %237 }
 0x195   :  { %v165_v48 = vmul.f32 %v238_v46, %v159_v45 }
 0x197   :  { %v174_v51 = vmul.f32 %v209_v47, %v165_v48 }
 0x198   :  { %v240_v52 = vpop.eup %239 }
 0x199   :  { %v166_v53 = vmul.f32 %v240_v52, %v160_v50  ;;  %v183_v54 = vadd.f32 %v210_v49, %v174_v51 }
 0x19b   :  { %v175_v55 = vmul.f32 %v209_v47, %v166_v53  ;;  %185 = vst.msk [vmem:[#allocation3] sm:$0xff] %vm29_vm1, %v183_v54 }
 0x19d   :  { %v184_v56 = vadd.f32 %v210_v49, %v175_v55 }
 0x19f   :  { %186 = vst.msk [vmem:[#allocation3 + $0x8] sm:$0xff] %vm29_vm1, %v184_v56 }
 0x1a0   :  { %252 = shalt.err (!%p249_p4)
}
 0x1a1   :  { %s253_s18 = scalar_lea.hbm %s366_s6, 256 }
 0x1a2   :  { %p254_p5 = scmp.ne.s32.totalorder %s366_s6, %s253_s18  ;;  %p257_p6 = scmp.lt.u32.totalorder %s253_s18, %s366_s6 }
 0x1a4   :  { %p259_p7 = pnand %p257_p6, %p254_p5 }
 0x1a6   :  { %262 = shalt.err (!%p259_p7)
}
 0x1a7   :  { %s268_s23 = smov 128   ;;  %s269_s24 = smov 8  }
 0x1a8   :  { %198 = dma.vmem_to_hbm [thread:$0]  %s193_s16, 256, %s366_s6, [#allocation4], %s268_s23, %s268_s23, %s269_s24  }
 0x1a9   :  { %263 = dma.done.wait [#allocation4], 256  }
 0x1aa   :  { %264 = vsyncadd [#allocation4], 4294967040 }
 0x1ab   :  { %202 = vsyncpa [#allocation4], 1 }

</bundles_post_ra>
